<compile_context>
chip_gen: v6e
topology: v6e:2x2x1
jax: 0.10.0
libtpu: 0.0.40
codegen_flags: <defaults>
</compile_context>

<pallas_src>
import functools

import jax
import jax.numpy as jnp
from jax.experimental import pallas as pl
from jax.experimental.pallas import tpu as pltpu

_TILE_BUDGET_BYTES = 12 * 1024 * 1024   # double-buffered (in + out) tile footprint target
_VMEM_LIMIT_BYTES = 32 * 1024 * 1024    # safe on v5e/v6e (128 MiB) and v7x (64 MiB)


def _prod(xs):
    r = 1
    for s in xs:
        r *= int(s)
    return r


def _compiler_params(n_grid_axes):
    return pltpu.CompilerParams(
        dimension_semantics=("parallel",) * n_grid_axes,
        vmem_limit_bytes=_VMEM_LIMIT_BYTES,
    )


def _pad_last_kernel(x_ref, o_ref, *, pad, length):
    # x_ref: (tile_r, L); o_ref: (tile_r, L + 2*pad).  Pad along the lane axis.
    o_ref[:, pad:pad + length] = x_ref[...]
    o_ref[:, :pad] = x_ref[:, length - pad:]
    o_ref[:, pad + length:] = x_ref[:, :pad]


def _pad_sublane_kernel(x_ref, o_ref, *, pad, length):
    # x_ref: (tile_r, P, tile_t); o_ref: (tile_r, P + 2*pad, tile_t).
    # Pad along sublanes; the lane axis stays dense (unmasked vector stores).
    o_ref[:, pad:pad + length, :] = x_ref[...]
    o_ref[:, :pad, :] = x_ref[:, length - pad:, :]
    o_ref[:, pad + length:, :] = x_ref[:, :pad, :]


def _pad_along_last(x, pad):
    lead = x.shape[:-1]
    L = int(x.shape[-1])
    Lp = L + 2 * pad
    R = _prod(lead)
    x2 = x.reshape(R, L)

    itemsize = jnp.dtype(x.dtype).itemsize
    per_row = 2 * (L + Lp) * itemsize            # in + out rows, double-buffered
    tile_r = max(8, (_TILE_BUDGET_BYTES // per_row) // 8 * 8)
    if tile_r >= R:
        tile_r = R                               # single block: equals full dim
    grid = (pl.cdiv(R, tile_r),)

    out2 = pl.pallas_call(
        functools.partial(_pad_last_kernel, pad=pad, length=L),
        out_shape=jax.ShapeDtypeStruct((R, Lp), x.dtype),
        grid=grid,
        in_specs=[pl.BlockSpec((tile_r, L), lambda i: (i, 0))],
        out_specs=pl.BlockSpec((tile_r, Lp), lambda i: (i, 0)),
        compiler_params=_compiler_params(1),
    )(x2)
    return out2.reshape(*lead, Lp)


def _pad_along_sublane(x, pad, dim):
    shape = x.shape
    P = int(shape[dim])
    Pp = P + 2 * pad
    lead = shape[:dim]
    trail = shape[dim + 1:]
    R = _prod(lead)
    T = _prod(trail)
    x3 = x.reshape(R, P, T)

    itemsize = jnp.dtype(x.dtype).itemsize
    per_row_lane = 2 * (P + Pp) * itemsize       # in + out columns, double-buffered

    tile_t = T
    tile_r = _TILE_BUDGET_BYTES // (per_row_lane * T)
    if tile_r >= R:
        tile_r = R
    elif tile_r < 1:
        # A single (P + Pp, T) slab overflows the budget: keep one row per step
        # and tile the dense lane axis in 128-lane multiples (stores stay
        # unmasked, DMAs stay large and contiguous along lanes).
        tile_r = 1
        if T > 128:
            tile_t = max(128, (_TILE_BUDGET_BYTES // per_row_lane) // 128 * 128)
            tile_t = min(tile_t, T)
    grid = (pl.cdiv(R, tile_r), pl.cdiv(T, tile_t))

    out3 = pl.pallas_call(
        functools.partial(_pad_sublane_kernel, pad=pad, length=P),
        out_shape=jax.ShapeDtypeStruct((R, Pp, T), x.dtype),
        grid=grid,
        in_specs=[pl.BlockSpec((tile_r, P, tile_t), lambda i, j: (i, 0, j))],
        out_specs=pl.BlockSpec((tile_r, Pp, tile_t), lambda i, j: (i, 0, j)),
        compiler_params=_compiler_params(2),
    )(x3)
    return out3.reshape(*lead, Pp, *trail)


def periodic_pad_1d(x, pad, dim=-1):
    """Matches PeriodicPad1d(pad, dim).forward(x) semantics exactly."""
    if pad <= 0:
        return x
    ndim = x.ndim
    dim = dim % ndim
    size = int(x.shape[dim])
    if pad > size:
        # torch.narrow in the reference module rejects this case too.
        raise ValueError(f"pad ({pad}) must not exceed size of padded dim ({size})")
    if dim == ndim - 1:
        return _pad_along_last(x, pad)
    return _pad_along_sublane(x, pad, dim)


if __name__ == "__main__":
    key = jax.random.PRNGKey(0)
    B, C, L = 2, 4, 16
    pad = 3
    x = jax.random.normal(key, (B, C, L), dtype=jnp.float32)

    # Default (last-dim) path.
    out = jax.block_until_ready(periodic_pad_1d(x, pad, dim=-1))
    ref = jnp.concatenate([x[..., L - pad:], x, x[..., :pad]], axis=-1)
    assert out.shape == (B, C, L + 2 * pad), out.shape
    assert jnp.allclose(out, ref), "mismatch vs reference wrap padding (dim=-1)"

    # Non-last dim: pads along sublanes, no moveaxis/transpose round trip.
    out_dim1 = jax.block_until_ready(periodic_pad_1d(x, 2, dim=1))
    ref_dim1 = jnp.concatenate([x[:, C - 2:, :], x, x[:, :2, :]], axis=1)
    assert out_dim1.shape == (B, C + 4, L)
    assert jnp.allclose(out_dim1, ref_dim1), "mismatch vs reference (dim=1)"

    # Larger shape to exercise the R-tiled, double-buffered, ragged-block path.
    xb = jax.random.normal(key, (16, 128, 512), dtype=jnp.float32)
    outb = jax.block_until_ready(periodic_pad_1d(xb, 7, dim=-1))
    refb = jnp.concatenate([xb[..., 512 - 7:], xb, xb[..., :7]], axis=-1)
    assert outb.shape == (16, 128, 512 + 14)
    assert jnp.allclose(outb, refb), "mismatch vs reference (tiled path)"

    print("KERNEL_OK")
</pallas_src>

<mosaic_0001>
module attributes {stable_mosaic.version = 11 : i64} {
  func.func @_pad_last_kernel(%arg0: i32, %arg1: memref<8x16xf32, #tpu.memory_space<vmem>>, %arg2: memref<8x22xf32, #tpu.memory_space<vmem>>) attributes {dimension_semantics = [#tpu.dimension_semantics<parallel>], iteration_bounds = array<i64: 1>, scalar_prefetch = 0 : i64, scratch_operands = 0 : i64, tpu.core_type = #tpu.core_type<tc>, window_params = [{transform_indices = @transform_0, window_bounds = array<i64: 8, 16>}, {transform_indices = @transform_1, window_bounds = array<i64: 8, 22>}]} {
    %c0 = arith.constant 0 : index
    %c0_0 = arith.constant 0 : index
    %0 = vector.load %arg1[%c0, %c0_0] : memref<8x16xf32, #tpu.memory_space<vmem>>, vector<8x16xf32>
    %c0_1 = arith.constant 0 : index
    %c3 = arith.constant 3 : index
    %1 = vector.load %arg2[%c0_1, %c3] : memref<8x22xf32, #tpu.memory_space<vmem>>, vector<8x16xf32>
    tpu.vector_store %arg2[%c0_1, %c3], %0 {strides = array<i32>} : memref<8x22xf32, #tpu.memory_space<vmem>>, vector<8x16xf32>,
    %c0_2 = arith.constant 0 : index
    %c13 = arith.constant 13 : index
    %2 = vector.load %arg1[%c0_2, %c13] : memref<8x16xf32, #tpu.memory_space<vmem>>, vector<8x3xf32>
    %c0_3 = arith.constant 0 : index
    %c0_4 = arith.constant 0 : index
    %3 = vector.load %arg2[%c0_3, %c0_4] : memref<8x22xf32, #tpu.memory_space<vmem>>, vector<8x3xf32>
    tpu.vector_store %arg2[%c0_3, %c0_4], %2 {strides = array<i32>} : memref<8x22xf32, #tpu.memory_space<vmem>>, vector<8x3xf32>,
    %c0_5 = arith.constant 0 : index
    %c0_6 = arith.constant 0 : index
    %4 = vector.load %arg1[%c0_5, %c0_6] : memref<8x16xf32, #tpu.memory_space<vmem>>, vector<8x3xf32>
    %c0_7 = arith.constant 0 : index
    %c19 = arith.constant 19 : index
    %5 = vector.load %arg2[%c0_7, %c19] : memref<8x22xf32, #tpu.memory_space<vmem>>, vector<8x3xf32>
    tpu.vector_store %arg2[%c0_7, %c19], %4 {strides = array<i32>} : memref<8x22xf32, #tpu.memory_space<vmem>>, vector<8x3xf32>,
    return
  }
  func.func @transform_0(%arg0: i32) -> (i32, i32) {
    %c0_i32 = arith.constant 0 : i32
    %c0_i32_0 = arith.constant 0 : i32
    return %arg0, %c0_i32 : i32, i32
  }
  func.func @transform_1(%arg0: i32) -> (i32, i32) {
    %c0_i32 = arith.constant 0 : i32
    %c0_i32_0 = arith.constant 0 : i32
    return %arg0, %c0_i32 : i32, i32
  }
}

</mosaic_0001>

<bundles_post_ra>
// kernel: tpu_custom_call.1
= control target key start
LH: loop header
LB: loop body
LE: loop exit
PB: predicated region body
PF: predicated region fallthrough
CT: control target
= control target key end

     0   :  { %6 = vsyncpa [#allocation3], 0  ;;  %s127_s0 = inlined_call_operand.hbm [shape: f32[8,16], index: 0, kind: input, shape index: {}]   ;;  %s128_s1 = inlined_call_operand.hbm [shape: f32[8,22], index: 1, kind: output, shape index: {}]  }
   0x1   :  { %7 = vsyncpa [#allocation4], 0  ;;  %s106_s6 = smov [#allocation2]  }
   0x2   :  { %s14_s7 = sshll.u32 %s106_s6, 4  ;;  %s15_s7 = int_to_ptr.vmem [resolvable:$true] %s14_s7 }
   0x3   :  { %s70_s8 = scalar_lea.vmem %s15_s7, 128  ;;  %p75_p1 = scmp.lt.s32.totalorder %s15_s7, %s15_s7 }
   0x4   :  { %p71_p0 = scmp.ne.s32.totalorder %s15_s7, %s70_s8  ;;  %p76_p2 = scmp.lt.s32.totalorder %s70_s8, %s70_s8 }
   0x6   :  { %p77_p3 = por %p76_p2, %p75_p1 }
   0x8   :  { %p78_p4 = pnand %p77_p3, %p71_p0 }
   0xa   :  { %81 = shalt.err (!%p78_p4)
}
   0xb   :  { %17 = dma.hbm_to_vmem [thread:$0]  %s127_s0, 128, %s15_s7, [#allocation3]  }
   0xc   :  { %102 = dma.done.wait [#allocation3], 128  }
   0xd   :  { %103 = vsyncadd [#allocation3], 4294967168  ;;  %v21_v0 = vld [vmem:[#allocation2] sm:$0xff]  ;;  %s107_s11 = smov 3   ;;  %s108_s12 = smov 19   ;;  %vm26_vm0 = vcmask 154648  }
   0xe   :  { %23 = vrot.lane.b32.xlu0 %v21_v0, %s107_s11  ;;  %37 = vrot.lane.b32.xlu1 %v21_v0, %s108_s12  ;;  %s109_s13 = smov 115   ;;  %s110_s14 = smov [#allocation5]   ;;  %vm33_vm1 = vcmask 23552   ;;  %vm40_vm2 = vcmask 179352  }
   0xf   :  { %s48_s15 = sshll.u32 %s110_s14, 4  ;;  %s49_s15 = int_to_ptr.vmem [resolvable:$true] %s48_s15 }
  0x10   :  { %s82_s0 = scalar_lea.vmem %s49_s15, 128  ;;  %p87_p6 = scmp.lt.s32.totalorder %s49_s15, %s49_s15 }
  0x11   :  { %p83_p5 = scmp.ne.s32.totalorder %s49_s15, %s82_s0  ;;  %p88_p7 = scmp.lt.s32.totalorder %s82_s0, %s82_s0 }
  0x12   :  { %30 = vrot.lane.b32.xlu0 %v21_v0, %s109_s13 }
  0x13   :  { %p89_p8 = por %p88_p7, %p87_p6 }
  0x15   :  { %p90_p9 = pnand %p89_p8, %p83_p5 }
  0x80   :  { %v24_v1 = vpop.permute.xlu0 %23  ;;  %v38_v2 = vpop.permute.xlu1 %37 }
  0x81   :  { %27 = vst.msk [vmem:[#allocation5] sm:$0xff] %vm26_vm0, %v24_v1 }
  0x84   :  { %v31_v3 = vpop.permute.xlu0 %30 }
  0x85   :  { %34 = vst.msk [vmem:[#allocation5] sm:$0xff] %vm33_vm1, %v31_v3 }
  0x86   :  { %41 = vst.msk [vmem:[#allocation5] sm:$0xff] %vm40_vm2, %v38_v2 }
  0x87   :  { %93 = shalt.err (!%p90_p9)
}
  0x88   :  { %51 = dma.vmem_to_hbm [thread:$0]  %s49_s15, 128, %s128_s1, [#allocation4]  }
  0x89   :  { %104 = dma.done.wait [#allocation4], 128  }
  0x8a   :  { %105 = vsyncadd [#allocation4], 4294967168 }
  0x8b   :  { %55 = vsyncpa [#allocation3], 1 }
  0x8c   :  { %56 = vsyncpa [#allocation4], 1 }

</bundles_post_ra>
